<compile_context>
chip_gen: v7x
topology: tpu7x:2x2x1
jax: 0.10.0
libtpu: 0.0.40
codegen_flags: <defaults>
</compile_context>

<pallas_src>
import math
import jax
import jax.numpy as jnp
from jax import lax
from jax.experimental import pallas as pl
from jax.experimental.pallas import tpu as pltpu


_LANE = 128      # vreg lane width (last dim)
_SUBLANE = 8     # vreg sublane count (second-to-last dim, f32)


def _round_up(a, b):
    return (a + b - 1) // b * b


def _choose_tile(dim, target):
    """Largest multiple of 128 that divides round_up(dim, 128) and is <= target.

    Guarantees tiling `dim` adds no padding beyond the mandatory 128-lane
    round-up (no pure-padding matmul work / weight traffic on that axis).
    """
    dim_p = _round_up(dim, _LANE)
    n = dim_p // _LANE
    target_n = max(1, target // _LANE)
    best = 1
    for d in range(1, n + 1):
        if n % d == 0 and d <= target_n:
            best = d
    return best * _LANE, dim_p


def _tpu_generation():
    try:
        kind = jax.devices()[0].device_kind.lower()
    except Exception:
        return "unknown"
    if "v5" in kind:
        return "v5"
    if "v6" in kind:
        return "v6"
    if "v7" in kind or "7" in kind:
        return "v7"
    if "v4" in kind:
        return "v4"
    return "unknown"


# Generation-dependent tiling / VMEM budgets:
#  * v6e: critical intensity ~918TF/1.4TB ~ 660 FLOP/byte -> tm >= 512;
#         128 MiB physical VMEM -> ~100 MiB cap.
#  * v7x: critical intensity ~996TF/3.2TB ~ 311 FLOP/byte -> tm ~ 384-512,
#         but only 64 MiB physical VMEM/TC -> cap 56 MiB; 2 TensorCores.
#  * v5e: critical intensity ~197TF/0.82TB ~ 240 FLOP/byte -> tm=256 is enough.
_GEN_DEFAULTS = {
    "v5": dict(tile_m=256, vmem_cap=100 << 20, two_tc=False),
    "v6": dict(tile_m=512, vmem_cap=100 << 20, two_tc=False),
    "v7": dict(tile_m=512, vmem_cap=56 << 20, two_tc=True),
    "v4": dict(tile_m=256, vmem_cap=100 << 20, two_tc=False),
    "unknown": dict(tile_m=512, vmem_cap=56 << 20, two_tc=False),
}


def _gelu_exact(x):
    # PyTorch nn.GELU() default is the exact erf-based GELU, kept in f32.
    # TODO(synk): if a bundle dump shows the f32 erf polynomial saturating the
    # VALU slot on v6e/v7x, switch to a tanh/exp-based form (EUP slot) or bf16.
    return 0.5 * x * (1.0 + lax.erf(x * (1.0 / math.sqrt(2.0))))


def _mlp_kernel_scratch(x_ref, w1_ref, b1_ref, w2_ref, b2_ref, o_ref, acc_ref):
    """Grid = (M tiles, Cout tiles, H tiles); H (axis 2) is the fc2 reduction."""
    h_idx = pl.program_id(2)

    @pl.when(h_idx == 0)
    def _init():
        acc_ref[...] = jnp.zeros_like(acc_ref)

    # fc1 partial hidden tile (MXU, f32 accumulate) + bias + exact GELU (f32).
    h = jnp.dot(x_ref[...], w1_ref[...], preferred_element_type=jnp.float32)
    h = _gelu_exact(h + b1_ref[...])

    # fc2 partial product accumulated into the f32 VMEM scratch.
    acc_ref[...] += jnp.dot(h.astype(w2_ref.dtype), w2_ref[...],
                            preferred_element_type=jnp.float32)

    @pl.when(h_idx == pl.num_programs(2) - 1)
    def _finalize():
        o_ref[...] = (acc_ref[...] + b2_ref[...]).astype(o_ref.dtype)


def _mlp_kernel_inplace(x_ref, w1_ref, b1_ref, w2_ref, b2_ref, o_ref):
    """f32-output variant: accumulate directly into the resident output block
    (drops the tm*tc*4 VMEM scratch, which buys a larger row tile)."""
    h_idx = pl.program_id(2)

    h = jnp.dot(x_ref[...], w1_ref[...], preferred_element_type=jnp.float32)
    h = _gelu_exact(h + b1_ref[...])
    partial = jnp.dot(h.astype(w2_ref.dtype), w2_ref[...],
                      preferred_element_type=jnp.float32)

    @pl.when(h_idx == 0)
    def _init():
        o_ref[...] = partial

    @pl.when(h_idx != 0)
    def _acc():
        o_ref[...] += partial

    @pl.when(h_idx == pl.num_programs(2) - 1)
    def _finalize():
        o_ref[...] += b2_ref[...]


def mlp_pallas(x, w1, b1, w2, b2, *, tile_m=None, tile_h=512, tile_cout=2048,
               compute_dtype=jnp.bfloat16):
    """y = fc2(GELU(fc1(x))); dropout p=0.0 is identity.

    x: (..., Cin); w1: (Cin, H); b1: (H,); w2: (H, Cout); b2: (Cout,)
    (weights stored transposed vs the PyTorch nn.Linear layout).
    """
    gen = _GEN_DEFAULTS[_tpu_generation()]
    if tile_m is None:
        tile_m = gen["tile_m"]
    vmem_cap = gen["vmem_cap"]

    orig_shape = x.shape
    out_dtype = x.dtype
    cin = orig_shape[-1]
    hid = w1.shape[1]
    cout = w2.shape[1]

    x2d = x.reshape(-1, cin)
    m = x2d.shape[0]

    in_item = jnp.dtype(compute_dtype).itemsize
    out_item = jnp.dtype(out_dtype).itemsize

    # ---- tile choices -------------------------------------------------------
    cin_p = _round_up(cin, _LANE)
    th, hid_p = _choose_tile(hid, tile_h)        # th divides hid_p
    tc, cout_p = _choose_tile(cout, tile_cout)   # tc divides cout_p

    # bf16 packs two rows per sublane -> round row tiles to 16 (8 for f32).
    row_gran = 16 if in_item < 4 else _SUBLANE
    tm = min(_round_up(tile_m, row_gran), _round_up(m, row_gran))

    # v7x: the "parallel" M axis shards across the two TensorCores; avoid a
    # single M tile when it can be split without breaking row granularity.
    if gen["two_tc"]:
        while (_round_up(m, tm) // tm) == 1 and tm >= 2 * row_gran \
                and (tm // 2) % row_gran == 0 and m > tm // 2:
            tm //= 2

    use_scratch = out_dtype != jnp.float32

    def _vmem_needed(tm_, th_, tc_):
        ins = 2 * ((tm_ * cin_p + cin_p * th_ + th_ * tc_) * in_item
                   + (_SUBLANE * th_ + _SUBLANE * tc_) * 4)        # f32 biases
        outs = 2 * tm_ * tc_ * out_item
        scratch = tm_ * tc_ * 4 if use_scratch else 0
        # f32 GELU intermediate + its bf16 cast copy + fc2 f32 partial.
        temps = tm_ * th_ * 4 + tm_ * th_ * in_item + tm_ * tc_ * 4
        return ins + outs + scratch + temps

    # Auto-shrink tiles if the estimate exceeds the per-generation VMEM budget
    # (robustness for very large Cin/Cout; avoids Mosaic VMEM-overflow errors).
    while _vmem_needed(tm, th, tc) > vmem_cap:
        if tm > row_gran:
            tm = max(row_gran, (tm // 2) // row_gran * row_gran)
        elif tc > _LANE:
            tc, _ = _choose_tile(cout, tc // 2)
        elif th > _LANE:
            th, _ = _choose_tile(hid, th // 2)
        else:
            break

    m_p = _round_up(m, tm)
    grid = (m_p // tm, cout_p // tc, hid_p // th)

    # ---- pad operands (zero padding is exact: GELU(0)=0 and padded w2 rows
    # are zero, so padded hidden/output columns contribute nothing) ----------
    def pad2d(a, rows, cols):
        return jnp.pad(a, ((0, rows - a.shape[0]), (0, cols - a.shape[1])))

    x_p = pad2d(x2d, m_p, cin_p).astype(compute_dtype)
    w1_p = pad2d(w1, cin_p, hid_p).astype(compute_dtype)
    w2_p = pad2d(w2, hid_p, cout_p).astype(compute_dtype)
    b1_p = jnp.pad(b1, (0, hid_p - hid)).astype(jnp.float32).reshape(1, hid_p)
    b2_p = jnp.pad(b2, (0, cout_p - cout)).astype(jnp.float32).reshape(1, cout_p)

    vmem_bytes = _vmem_needed(tm, th, tc)
    vmem_limit = int(min(vmem_cap, max(32 << 20, 2 * vmem_bytes)))

    # Cost hint: weights are re-streamed once per (M tile[, Cout tile]).
    gm, gc, gh = grid
    cost = pl.CostEstimate(
        flops=int(2 * m_p * hid_p * (cin_p + cout_p)),
        transcendentals=int(m_p * hid_p),
        bytes_accessed=int(
            m_p * cin_p * in_item                       # x, once per M tile
            + gm * gc * cin_p * hid_p * in_item         # w1 re-stream
            + gm * hid_p * cout_p * in_item             # w2 re-stream
            + gm * gc * (hid_p + cout_p) * 4            # biases
            + m_p * cout_p * out_item))                 # output

    kernel = _mlp_kernel_scratch if use_scratch else _mlp_kernel_inplace
    scratch_shapes = [pltpu.VMEM((tm, tc), jnp.float32)] if use_scratch else []

    out = pl.pallas_call(
        kernel,
        out_shape=jax.ShapeDtypeStruct((m_p, cout_p), out_dtype),
        grid_spec=pltpu.PrefetchScalarGridSpec(
            num_scalar_prefetch=0,
            grid=grid,
            in_specs=[
                pl.BlockSpec((tm, cin_p), lambda i, c, h: (i, 0)),   # x row tile
                pl.BlockSpec((cin_p, th), lambda i, c, h: (0, h)),   # w1 hidden tile
                pl.BlockSpec((1, th),     lambda i, c, h: (0, h)),   # b1 hidden tile
                pl.BlockSpec((th, tc),    lambda i, c, h: (h, c)),   # w2 tile
                pl.BlockSpec((1, tc),     lambda i, c, h: (0, c)),   # b2 tile
            ],
            out_specs=pl.BlockSpec((tm, tc), lambda i, c, h: (i, c)),
            scratch_shapes=scratch_shapes,
        ),
        compiler_params=pltpu.CompilerParams(
            dimension_semantics=("parallel", "parallel", "arbitrary"),
            vmem_limit_bytes=vmem_limit),
        cost_estimate=cost,
    )(x_p, w1_p, b1_p, w2_p, b2_p)

    out = out[:m, :cout]
    return out.reshape(*orig_shape[:-1], cout)


def mlp_reference(x, w1, b1, w2, b2, compute_dtype=jnp.float32):
    """Plain-JAX reference using the same mixed-precision recipe as the kernel."""
    h = jnp.dot(x.astype(compute_dtype), w1.astype(compute_dtype),
                preferred_element_type=jnp.float32)
    h = _gelu_exact(h + b1.astype(jnp.float32))
    y = jnp.dot(h.astype(compute_dtype), w2.astype(compute_dtype),
                preferred_element_type=jnp.float32)
    return (y + b2.astype(jnp.float32)).astype(x.dtype)


if __name__ == "__main__":
    key = jax.random.PRNGKey(0)
    B, N = 2, 8               # batch, sequence
    in_features = 32
    hidden_features = 64
    out_features = 32

    kx, kw1, kb1, kw2, kb2 = jax.random.split(key, 5)

    # nn.Linear-style init; weights stored transposed vs PyTorch layout.
    bound1 = 1.0 / math.sqrt(in_features)
    w1 = jax.random.uniform(kw1, (in_features, hidden_features),
                            minval=-bound1, maxval=bound1, dtype=jnp.float32)
    b1 = jax.random.uniform(kb1, (hidden_features,),
                            minval=-bound1, maxval=bound1, dtype=jnp.float32)
    bound2 = 1.0 / math.sqrt(hidden_features)
    w2 = jax.random.uniform(kw2, (hidden_features, out_features),
                            minval=-bound2, maxval=bound2, dtype=jnp.float32)
    b2 = jax.random.uniform(kb2, (out_features,),
                            minval=-bound2, maxval=bound2, dtype=jnp.float32)

    x = jax.random.normal(kx, (B, N, in_features), dtype=jnp.float32)

    # ---- exact f32 compute path (accumulate-in-output kernel) vs reference --
    y_f32 = jax.block_until_ready(
        mlp_pallas(x, w1, b1, w2, b2, compute_dtype=jnp.float32))
    y_ref_f32 = mlp_reference(x, w1, b1, w2, b2, compute_dtype=jnp.float32)
    assert y_f32.shape == (B, N, out_features)
    assert jnp.allclose(y_f32, y_ref_f32, atol=1e-5, rtol=1e-5), \
        "f32 path mismatch vs reference"

    # ---- default bf16 MXU path (scratch-accumulator kernel) vs bf16 ref -----
    xb = x.astype(jnp.bfloat16)
    y_bf16 = jax.block_until_ready(mlp_pallas(xb, w1, b1, w2, b2))
    y_ref_bf16 = mlp_reference(xb, w1, b1, w2, b2, compute_dtype=jnp.bfloat16)
    assert y_bf16.shape == (B, N, out_features)
    assert jnp.allclose(y_bf16.astype(jnp.float32),
                        y_ref_bf16.astype(jnp.float32),
                        atol=1e-2, rtol=1e-2), \
        "bf16 path mismatch vs bf16 reference"

    print("KERNEL_OK")
</pallas_src>

<mosaic_0001>
module attributes {stable_mosaic.version = 11 : i64} {
  func.func @_mlp_kernel_inplace(%arg0: i32, %arg1: i32, %arg2: i32, %arg3: memref<16x128xf32, #tpu.memory_space<vmem>>, %arg4: memref<128x128xf32, #tpu.memory_space<vmem>>, %arg5: memref<1x128xf32, #tpu.memory_space<vmem>>, %arg6: memref<128x128xf32, #tpu.memory_space<vmem>>, %arg7: memref<1x128xf32, #tpu.memory_space<vmem>>, %arg8: memref<16x128xf32, #tpu.memory_space<vmem>>) attributes {dimension_semantics = [#tpu.dimension_semantics<parallel>, #tpu.dimension_semantics<parallel>, #tpu.dimension_semantics<arbitrary>], iteration_bounds = array<i64: 1, 1, 1>, scalar_prefetch = 0 : i64, scratch_operands = 0 : i64, tpu.core_type = #tpu.core_type<tc>, window_params = [{transform_indices = @transform_0, window_bounds = array<i64: 16, 128>}, {transform_indices = @transform_1, window_bounds = array<i64: 128, 128>}, {transform_indices = @transform_2, window_bounds = array<i64: 1, 128>}, {transform_indices = @transform_3, window_bounds = array<i64: 128, 128>}, {transform_indices = @transform_4, window_bounds = array<i64: 1, 128>}, {transform_indices = @transform_5, window_bounds = array<i64: 16, 128>}]} {
    %c0 = arith.constant 0 : index
    %c0_0 = arith.constant 0 : index
    %0 = vector.load %arg3[%c0, %c0_0] : memref<16x128xf32, #tpu.memory_space<vmem>>, vector<16x128xf32>
    %c0_1 = arith.constant 0 : index
    %c0_2 = arith.constant 0 : index
    %1 = vector.load %arg4[%c0_1, %c0_2] : memref<128x128xf32, #tpu.memory_space<vmem>>, vector<128x128xf32>
    %cst = arith.constant dense<0.000000e+00> : vector<16x128xf32>
    %2 = tpu.matmul %0, %1, %cst {dimension_numbers = #tpu.dot_dimension_numbers<[1], [0], [0], [1], [0, 0, 1, 1], [], []>} : vector<16x128xf32>, vector<128x128xf32>, vector<16x128xf32> -> vector<16x128xf32>
    %c0_3 = arith.constant 0 : index
    %c0_4 = arith.constant 0 : index
    %3 = vector.load %arg5[%c0_3, %c0_4] : memref<1x128xf32, #tpu.memory_space<vmem>>, vector<1x128xf32>
    %4 = vector.broadcast %3 : vector<1x128xf32> to vector<16x128xf32>
    %5 = arith.addf %2, %4 : vector<16x128xf32>
    %cst_5 = arith.constant 5.000000e-01 : f32
    %6 = vector.broadcast %cst_5 : f32 to vector<16x128xf32>
    %7 = arith.mulf %6, %5 : vector<16x128xf32>
    %cst_6 = arith.constant 0.707106769 : f32
    %8 = vector.broadcast %cst_6 : f32 to vector<16x128xf32>
    %9 = arith.mulf %5, %8 : vector<16x128xf32>
    %10 = math.erf %9 : vector<16x128xf32>
    %cst_7 = arith.constant 1.000000e+00 : f32
    %11 = vector.broadcast %cst_7 : f32 to vector<16x128xf32>
    %12 = arith.addf %11, %10 : vector<16x128xf32>
    %13 = arith.mulf %7, %12 : vector<16x128xf32>
    %c0_8 = arith.constant 0 : index
    %c0_9 = arith.constant 0 : index
    %14 = vector.load %arg6[%c0_8, %c0_9] : memref<128x128xf32, #tpu.memory_space<vmem>>, vector<128x128xf32>
    %cst_10 = arith.constant dense<0.000000e+00> : vector<16x128xf32>
    %15 = tpu.matmul %13, %14, %cst_10 {dimension_numbers = #tpu.dot_dimension_numbers<[1], [0], [0], [1], [0, 0, 1, 1], [], []>} : vector<16x128xf32>, vector<128x128xf32>, vector<16x128xf32> -> vector<16x128xf32>
    %c0_i32 = arith.constant 0 : i32
    %16 = arith.cmpi eq, %arg2, %c0_i32 : i32
    %17 = arith.extui %16 : i1 to i32
    %c0_i32_11 = arith.constant 0 : i32
    %18 = arith.cmpi ne, %17, %c0_i32_11 : i32
    scf.if %18 {
      %c0_16 = arith.constant 0 : index
      %c0_17 = arith.constant 0 : index
      %25 = vector.load %arg8[%c0_16, %c0_17] : memref<16x128xf32, #tpu.memory_space<vmem>>, vector<16x128xf32>
      tpu.vector_store %arg8[%c0_16, %c0_17], %15 {strides = array<i32>} : memref<16x128xf32, #tpu.memory_space<vmem>>, vector<16x128xf32>,
    } else {
    }
    %c0_i32_12 = arith.constant 0 : i32
    %19 = arith.cmpi ne, %arg2, %c0_i32_12 : i32
    %20 = arith.extui %19 : i1 to i32
    %c0_i32_13 = arith.constant 0 : i32
    %21 = arith.cmpi ne, %20, %c0_i32_13 : i32
    scf.if %21 {
      %c0_16 = arith.constant 0 : index
      %c0_17 = arith.constant 0 : index
      %25 = vector.load %arg8[%c0_16, %c0_17] : memref<16x128xf32, #tpu.memory_space<vmem>>, vector<16x128xf32>
      %26 = arith.addf %25, %15 : vector<16x128xf32>
      %c0_18 = arith.constant 0 : index
      %c0_19 = arith.constant 0 : index
      %27 = vector.load %arg8[%c0_18, %c0_19] : memref<16x128xf32, #tpu.memory_space<vmem>>, vector<16x128xf32>
      tpu.vector_store %arg8[%c0_18, %c0_19], %26 {strides = array<i32>} : memref<16x128xf32, #tpu.memory_space<vmem>>, vector<16x128xf32>,
    } else {
    }
    %c0_i32_14 = arith.constant 0 : i32
    %22 = arith.cmpi eq, %arg2, %c0_i32_14 : i32
    %23 = arith.extui %22 : i1 to i32
    %c0_i32_15 = arith.constant 0 : i32
    %24 = arith.cmpi ne, %23, %c0_i32_15 : i32
    scf.if %24 {
      %c0_16 = arith.constant 0 : index
      %c0_17 = arith.constant 0 : index
      %25 = vector.load %arg8[%c0_16, %c0_17] : memref<16x128xf32, #tpu.memory_space<vmem>>, vector<16x128xf32>
      %c0_18 = arith.constant 0 : index
      %c0_19 = arith.constant 0 : index
      %26 = vector.load %arg7[%c0_18, %c0_19] : memref<1x128xf32, #tpu.memory_space<vmem>>, vector<1x128xf32>
      %27 = vector.broadcast %26 : vector<1x128xf32> to vector<16x128xf32>
      %28 = arith.addf %25, %27 : vector<16x128xf32>
      %c0_20 = arith.constant 0 : index
      %c0_21 = arith.constant 0 : index
      %29 = vector.load %arg8[%c0_20, %c0_21] : memref<16x128xf32, #tpu.memory_space<vmem>>, vector<16x128xf32>
      tpu.vector_store %arg8[%c0_20, %c0_21], %28 {strides = array<i32>} : memref<16x128xf32, #tpu.memory_space<vmem>>, vector<16x128xf32>,
    } else {
    }
    return
  }
  func.func @transform_0(%arg0: i32, %arg1: i32, %arg2: i32) -> (i32, i32) {
    %c0_i32 = arith.constant 0 : i32
    %c0_i32_0 = arith.constant 0 : i32
    return %arg0, %c0_i32 : i32, i32
  }
  func.func @transform_1(%arg0: i32, %arg1: i32, %arg2: i32) -> (i32, i32) {
    %c0_i32 = arith.constant 0 : i32
    %c0_i32_0 = arith.constant 0 : i32
    return %c0_i32, %arg2 : i32, i32
  }
  func.func @transform_2(%arg0: i32, %arg1: i32, %arg2: i32) -> (i32, i32) {
    %c0_i32 = arith.constant 0 : i32
    %c0_i32_0 = arith.constant 0 : i32
    return %c0_i32, %arg2 : i32, i32
  }
  func.func @transform_3(%arg0: i32, %arg1: i32, %arg2: i32) -> (i32, i32) {
    %c0_i32 = arith.constant 0 : i32
    return %arg2, %arg1 : i32, i32
  }
  func.func @transform_4(%arg0: i32, %arg1: i32, %arg2: i32) -> (i32, i32) {
    %c0_i32 = arith.constant 0 : i32
    %c0_i32_0 = arith.constant 0 : i32
    return %c0_i32, %arg1 : i32, i32
  }
  func.func @transform_5(%arg0: i32, %arg1: i32, %arg2: i32) -> (i32, i32) {
    %c0_i32 = arith.constant 0 : i32
    return %arg0, %arg1 : i32, i32
  }
}

</mosaic_0001>

<bundles_post_ra>
// kernel: tpu_custom_call.1
= control target key start
LH: loop header
LB: loop body
LE: loop exit
PB: predicated region body
PF: predicated region fallthrough
CT: control target
= control target key end

     0   :  { %10 = vsyncpa [#allocation3], 0  ;;  %s698_s0 = inlined_call_operand.hbm [shape: f32[16,128], index: 0, kind: input, shape index: {}]   ;;  %s699_s1 = inlined_call_operand.hbm [shape: f32[128,128], index: 1, kind: input, shape index: {}]   ;;  %s700_s2 = inlined_call_operand.vmem [shape: f32[1,128], index: 2, kind: input, shape index: {}]   ;;  %s701_s3 = inlined_call_operand.hbm [shape: f32[128,128], index: 3, kind: input, shape index: {}]   ;;  %s702_s4 = inlined_call_operand.vmem [shape: f32[1,128], index: 4, kind: input, shape index: {}]   ;;  %s703_s5 = inlined_call_operand.hbm [shape: f32[16,128], index: 5, kind: output, shape index: {}]  }
   0x1   :  { %11 = vsyncpa [#allocation6], 0 }
   0x2   :  { %12 = vsyncpa [#allocation4], 0  ;;  %s589_s18 = smov [#allocation5]   ;;  %s590_s20 = smov [#allocation2]  }
   0x3   :  { %s30_s19 = sshll.u32 %s589_s18, 4  ;;  %s18_s21 = sshll.u32 %s590_s20, 4  ;;  %s31_s19 = int_to_ptr.vmem [resolvable:$true] %s30_s19  ;;  %s625_s21 = int_to_ptr.vmem [resolvable:$true] %s18_s21 }
   0x4   :  { %s495_s24 = scalar_lea.hbm %s699_s1, 2048 }
   0x5   :  { %p496_p0 = scmp.ne.s32.totalorder %s699_s1, %s495_s24  ;;  %p499_p1 = scmp.lt.u32.totalorder %s495_s24, %s699_s1 }
   0x7   :  { %p501_p2 = pnand %p499_p1, %p496_p0 }
   0x9   :  { %504 = shalt.err (!%p501_p2)
}
   0xa   :  { %s505_s29 = scalar_lea.vmem %s31_s19, 2048  ;;  %p510_p4 = scmp.lt.s32.totalorder %s31_s19, %s31_s19 }
   0xb   :  { %p506_p3 = scmp.ne.s32.totalorder %s31_s19, %s505_s29  ;;  %p511_p5 = scmp.lt.s32.totalorder %s505_s29, %s505_s29 }
   0xd   :  { %p512_p6 = por %p511_p5, %p510_p4 }
   0xf   :  { %p513_p7 = pnand %p512_p6, %p506_p3 }
  0x11   :  { %516 = shalt.err (!%p513_p7)
}
  0x12   :  { %s591_s30 = smov 128   ;;  %s592_s6 = smov 8  }
  0x13   :  { %36 = dma.hbm_to_vmem [thread:$0]  %s699_s1, 2048, %s31_s19, [#allocation6], %s591_s30, %s591_s30, %s592_s6  }
  0x14   :  { %s517_s11 = scalar_lea.hbm %s698_s0, 256 }
  0x15   :  { %p518_p8 = scmp.ne.s32.totalorder %s698_s0, %s517_s11  ;;  %p521_p9 = scmp.lt.u32.totalorder %s517_s11, %s698_s0 }
  0x17   :  { %p523_p10 = pnand %p521_p9, %p518_p8 }
  0x19   :  { %526 = shalt.err (!%p523_p10)
}
  0x1a   :  { %s527_s16 = scalar_lea.vmem %s625_s21, 256  ;;  %p532_p12 = scmp.lt.s32.totalorder %s625_s21, %s625_s21 }
  0x1b   :  { %p528_p11 = scmp.ne.s32.totalorder %s625_s21, %s527_s16  ;;  %p533_p13 = scmp.lt.s32.totalorder %s527_s16, %s527_s16 }
  0x1d   :  { %p534_p0 = por %p533_p13, %p532_p12 }
  0x1f   :  { %p535_p1 = pnand %p534_p0, %p528_p11 }
  0x21   :  { %538 = shalt.err (!%p535_p1)
}
  0x22   :  { %24 = dma.hbm_to_vmem [thread:$0]  %s698_s0, 256, %s625_s21, [#allocation3], %s591_s30, %s591_s30, %s592_s6  }
  0x23   :  { %s593_s18 = smov [#allocation7]   ;;  %s539_s23 = scalar_lea.hbm %s701_s3, 2048 }
  0x24   :  { %s44_s19 = sshll.u32 %s593_s18, 4  ;;  %p540_p2 = scmp.ne.s32.totalorder %s701_s3, %s539_s23  ;;  %s45_s19 = int_to_ptr.vmem [resolvable:$true] %s44_s19 }
  0x25   :  { %p543_p3 = scmp.lt.u32.totalorder %s539_s23, %s701_s3 }
  0x27   :  { %p545_p4 = pnand %p543_p3, %p540_p2 }
  0x29   :  { %548 = shalt.err (!%p545_p4)
}
  0x2a   :  { %s549_s28 = scalar_lea.vmem %s45_s19, 2048  ;;  %p554_p6 = scmp.lt.s32.totalorder %s45_s19, %s45_s19 }
  0x2b   :  { %p550_p5 = scmp.ne.s32.totalorder %s45_s19, %s549_s28  ;;  %p555_p7 = scmp.lt.s32.totalorder %s549_s28, %s549_s28 }
  0x2d   :  { %p556_p8 = por %p555_p7, %p554_p6 }
  0x2f   :  { %p557_p9 = pnand %p556_p8, %p550_p5 }
  0x31   :  { %560 = shalt.err (!%p557_p9)
}
  0x32   :  { %50 = dma.hbm_to_vmem [thread:$0]  %s701_s3, 2048, %s45_s19, [#allocation6], %s591_s30, %s591_s30, %s592_s6  }
  0x33   :  { %583 = dma.done.wait [#allocation3], 256  }
  0x34   :  { %584 = vsyncadd [#allocation3], 4294967040 }
  0x35   :  { %585 = dma.done.wait [#allocation6], 4096  }
  0x36   :  { %586 = vsyncadd [#allocation6], 4294963200  ;;  %v64_v0 = vld [vmem:[#allocation5] sm:$0xff]  ;;  %v65_v1 = vld [vmem:[#allocation5 + $0x8] sm:$0xff]  ;;  %s594_s8 = smov [#allocation8]  }
  0x37   :  { %v66_v2 = vld [vmem:[#allocation5 + $0x10] sm:$0xff]  ;;  %v421_v3 = vpack.c.bf16 %v65_v1, %v64_v0  ;;  %v67_v4 = vld [vmem:[#allocation5 + $0x18] sm:$0xff]  ;;  %v68_v6 = vld [vmem:[#allocation5 + $0x20] sm:$0xff]  ;;  %s300_s9 = sshll.u32 %s594_s8, 4  ;;  %s301_s9 = int_to_ptr.vmem [resolvable:$true] %s300_s9 }
  0x38   :  { %v425_v5 = vpack.c.bf16 %v67_v4, %v66_v2  ;;  %v69_v7 = vld [vmem:[#allocation5 + $0x28] sm:$0xff]  ;;  %v70_v9 = vld [vmem:[#allocation5 + $0x30] sm:$0xff]  ;;  %v71_v10 = vld [vmem:[#allocation5 + $0x38] sm:$0xff]  ;;  %s561_s10 = scalar_lea.vmem %s301_s9, 256  ;;  %p566_p11 = scmp.lt.s32.totalorder %s301_s9, %s301_s9 }
  0x39   :  { %422 = vmatprep.subr.bf16.mxu0 %v421_v3  ;;  %v429_v8 = vpack.c.bf16 %v69_v7, %v68_v6  ;;  %v62_v11 = vld [vmem:[#allocation2] sm:$0xff]  ;;  %v172_v12 = vld [vmem:[#allocation7] sm:$0xff]  ;;  %v173_v13 = vld [vmem:[#allocation7 + $0x8] sm:$0xff]  ;;  %v433_v20 = vpack.c.bf16 %v71_v10, %v70_v9  ;;  %p562_p10 = scmp.ne.s32.totalorder %s301_s9, %s561_s10  ;;  %p567_p12 = scmp.lt.s32.totalorder %s561_s10, %s561_s10 }
  0x3a   :  { %424 = vmatpush3.bf16.msra.mxu0 %v421_v3  ;;  %383 = vmatprep.mubr.f32.mxu0 %v62_v11  ;;  %v174_v14 = vld [vmem:[#allocation7 + $0x10] sm:$0xff]  ;;  %v453_v15 = vpack.c.bf16 %v173_v13, %v172_v12  ;;  %v175_v16 = vld [vmem:[#allocation7 + $0x18] sm:$0xff]  ;;  %v176_v18 = vld [vmem:[#allocation7 + $0x20] sm:$0xff] }
  0x3b   :  { %426 = vmatprep.subr.bf16.mxu0 %v425_v5  ;;  %v457_v17 = vpack.c.bf16 %v175_v16, %v174_v14  ;;  %v177_v19 = vld [vmem:[#allocation7 + $0x28] sm:$0xff]  ;;  %v72_v21 = vld [vmem:[#allocation5 + $0x40] sm:$0xff]  ;;  %v74_v25 = vld [vmem:[#allocation5 + $0x50] sm:$0xff]  ;;  %p568_p13 = por %p567_p12, %p566_p11 }
  0x3c   :  { %454 = vmatprep.subr.bf16.mxu1 %v453_v15  ;;  %v73_v22 = vld [vmem:[#allocation5 + $0x48] sm:$0xff]  ;;  %v461_v23 = vpack.c.bf16 %v177_v19, %v176_v18  ;;  %v75_v26 = vld [vmem:[#allocation5 + $0x58] sm:$0xff]  ;;  %v76_v28 = vld [vmem:[#allocation5 + $0x60] sm:$0xff] }
  0x3d   :  { %456 = vmatpush3.bf16.msra.mxu1 %v453_v15  ;;  %v437_v24 = vpack.c.bf16 %v73_v22, %v72_v21  ;;  %v441_v27 = vpack.c.bf16 %v75_v26, %v74_v25  ;;  %v77_v29 = vld [vmem:[#allocation5 + $0x68] sm:$0xff]  ;;  %v78_v31 = vld [vmem:[#allocation5 + $0x70] sm:$0xff]  ;;  %v79_v32 = vld [vmem:[#allocation5 + $0x78] sm:$0xff]  ;;  %p569_p0 = pnand %p568_p13, %p562_p10 }
  0x3e   :  { %428 = vmatpush3.bf16.msra.mxu0 %v425_v5  ;;  %458 = vmatprep.subr.bf16.mxu1 %v457_v17  ;;  %v445_v30 = vpack.c.bf16 %v77_v29, %v76_v28  ;;  %v449_v33 = vpack.c.bf16 %v79_v32, %v78_v31  ;;  %v63_v34 = vld [vmem:[#allocation2 + $0x8] sm:$0xff]  ;;  %v178_v35 = vld [vmem:[#allocation7 + $0x30] sm:$0xff]  ;;  %v180_v38 = vld [vmem:[#allocation7 + $0x40] sm:$0xff] }
  0x3f   :  { %430 = vmatprep.subr.bf16.mxu0 %v429_v8  ;;  %v179_v36 = vld [vmem:[#allocation7 + $0x38] sm:$0xff]  ;;  %v181_v39 = vld [vmem:[#allocation7 + $0x48] sm:$0xff]  ;;  %v182_v41 = vld [vmem:[#allocation7 + $0x50] sm:$0xff] }
  0x40   :  { %v465_v37 = vpack.c.bf16 %v179_v36, %v178_v35  ;;  %v469_v40 = vpack.c.bf16 %v181_v39, %v180_v38  ;;  %v183_v42 = vld [vmem:[#allocation7 + $0x58] sm:$0xff]  ;;  %v184_v44 = vld [vmem:[#allocation7 + $0x60] sm:$0xff]  ;;  %v185_v45 = vld [vmem:[#allocation7 + $0x68] sm:$0xff] }
  0x41   :  { %460 = vmatpush3.bf16.msra.mxu1 %v457_v17  ;;  %v473_v43 = vpack.c.bf16 %v183_v42, %v182_v41  ;;  %v477_v46 = vpack.c.bf16 %v185_v45, %v184_v44  ;;  %v186_v47 = vld [vmem:[#allocation7 + $0x70] sm:$0xff]  ;;  %v187_v48 = vld [vmem:[#allocation7 + $0x78] sm:$0xff] }
  0x42   :  { %432 = vmatpush3.bf16.msra.mxu0 %v429_v8  ;;  %462 = vmatprep.subr.bf16.mxu1 %v461_v23  ;;  %v481_v49 = vpack.c.bf16 %v187_v48, %v186_v47  ;;  %v313_v50 = vld [vmem:[%s700_s2] ss:$0 sm:$0xff] }
  0x43   :  { %434 = vmatprep.subr.bf16.mxu0 %v433_v20  ;;  %v314_v1 = vld [vmem:[%s702_s4] ss:$0 sm:$0xff] }
  0x45   :  { %464 = vmatpush3.bf16.msra.mxu1 %v461_v23 }
  0x46   :  { %436 = vmatpush3.bf16.msra.mxu0 %v433_v20  ;;  %466 = vmatprep.subr.bf16.mxu1 %v465_v37 }
  0x47   :  { %438 = vmatprep.subr.bf16.mxu0 %v437_v24 }
  0x49   :  { %468 = vmatpush3.bf16.msra.mxu1 %v465_v37 }
  0x4a   :  { %440 = vmatpush3.bf16.msra.mxu0 %v437_v24  ;;  %470 = vmatprep.subr.bf16.mxu1 %v469_v40 }
  0x4b   :  { %442 = vmatprep.subr.bf16.mxu0 %v441_v27 }
  0x4d   :  { %472 = vmatpush3.bf16.msra.mxu1 %v469_v40 }
  0x4e   :  { %444 = vmatpush3.bf16.msra.mxu0 %v441_v27  ;;  %474 = vmatprep.subr.bf16.mxu1 %v473_v43 }
  0x4f   :  { %446 = vmatprep.subr.bf16.mxu0 %v445_v30 }
  0x51   :  { %476 = vmatpush3.bf16.msra.mxu1 %v473_v43 }
  0x52   :  { %448 = vmatpush3.bf16.msra.mxu0 %v445_v30  ;;  %478 = vmatprep.subr.bf16.mxu1 %v477_v46 }
  0x53   :  { %450 = vmatprep.subr.bf16.mxu0 %v449_v33 }
  0x55   :  { %480 = vmatpush3.bf16.msra.mxu1 %v477_v46 }
  0x56   :  { %452 = vmatpush3.bf16.msra.mxu0 %v449_v33  ;;  %482 = vmatprep.subr.bf16.mxu1 %v481_v49 }
  0x59   :  { %384 = vmatmul.mubr.f32.vlgmr.msra.gmra.mrb[0].mxu0 %v63_v34  ;;  %484 = vmatpush3.bf16.msra.mxu1 %v481_v49 }
 0x12c   :  { %v385_v51 = vpop.f32.mrb[0].mxu0 }
 0x12d   :  { %v159_v52 = vadd.f32 %v385_v51, %v313_v50  ;;  %v153_v53 = vpop.f32.mrb[1].mxu0 }
 0x12e   :  { %v154_v54 = vadd.f32 %v313_v50, %v153_v53 }
 0x12f   :  { %v165_v55 = vmul.f32 0.70710677, %v159_v52  ;;  %v163_v62 = vmul.f32 0.5, %v159_v52 }
 0x130   :  { %v164_v56 = vmul.f32 0.70710677, %v154_v54  ;;  %v162_v60 = vmul.f32 0.5, %v154_v54 }
 0x131   :  { %491 = verf.f32 %v165_v55 }
 0x132   :  { %493 = verf.f32 %v164_v56 }
 0x13b   :  { %v492_v57 = vpop.eup %491 }
 0x13c   :  { %v494_v58 = vpop.eup %493  ;;  %v169_v59 = vadd.f32 1.0, %v492_v57 }
 0x13d   :  { %v168_v61 = vadd.f32 1.0, %v494_v58 }
 0x13e   :  { %v171_v0 = vmul.f32 %v169_v59, %v163_v62 }
 0x13f   :  { %v170_v63 = vmul.f32 %v168_v61, %v162_v60 }
 0x141   :  { %418 = vmatprep.mubr.f32.mxu1 %v170_v63 }
 0x142   :  { %419 = vmatmul.mubr.f32.vlgmr.msra.gmra.mrb[0].mxu1 %v171_v0 }
 0x215   :  { %v420_v2 = vpop.f32.mrb[0].mxu1 }
 0x216   :  { %v254_v3 = vpop.f32.mrb[1].mxu1  ;;  %v292_v4 = vadd.f32 %v420_v2, %v314_v1 }
 0x217   :  { %v291_v5 = vadd.f32 %v314_v1, %v254_v3 }
 0x218   :  { %294 = vst [vmem:[#allocation8 + $0x8] sm:$0xff] %v292_v4 }
 0x219   :  { %293 = vst [vmem:[#allocation8] sm:$0xff] %v291_v5 }
 0x21a   :  { %572 = shalt.err (!%p569_p0)
}
 0x21b   :  { %s573_s4 = scalar_lea.hbm %s703_s5, 256 }
 0x21c   :  { %p574_p1 = scmp.ne.s32.totalorder %s703_s5, %s573_s4  ;;  %p577_p2 = scmp.lt.u32.totalorder %s573_s4, %s703_s5 }
 0x21e   :  { %p579_p3 = pnand %p577_p2, %p574_p1 }
 0x220   :  { %582 = shalt.err (!%p579_p3)
}
 0x221   :  { %306 = dma.vmem_to_hbm [thread:$0]  %s301_s9, 256, %s703_s5, [#allocation4], %s591_s30, %s591_s30, %s592_s6  }
 0x222   :  { %587 = dma.done.wait [#allocation4], 256  }
 0x223   :  { %588 = vsyncadd [#allocation4], 4294967040 }
 0x224   :  { %310 = vsyncpa [#allocation3], 1 }
 0x225   :  { %311 = vsyncpa [#allocation6], 1 }
 0x226   :  { %312 = vsyncpa [#allocation4], 1 }

</bundles_post_ra>
